<compile_context>
chip_gen: v7x
topology: tpu7x:2x2x1
jax: 0.10.0
libtpu: 0.0.40
codegen_flags: <defaults>
</compile_context>

<pallas_src>
import functools

import jax
import jax.numpy as jnp
from jax.experimental import pallas as pl
from jax.experimental.pallas import tpu as pltpu


def _round_up(x, m):
    return (x + m - 1) // m * m


def _patchify_kernel(img_ref, out_ref, *, C, patch, rows, grid_w):
    # img_ref: (C, rows, patch, grid_w, patch) -- one strip of `rows` patch-rows;
    #          each (grid_w, patch) tile already holds one image row (data in
    #          lanes [0, patch)), courtesy of the wrapper reshape + input DMA.
    # out_ref: (1, rows, grid_w, C*patch*patch) -- lane-dense flat patches.
    #
    # Only the small c/ki loop is unrolled (C*patch statements, <= ~48); rows and
    # grid_w are carried as array dims of every copy, so each statement is a
    # single lane-shifted slab store and the body stays compact.
    for c in range(C):
        for ki in range(patch):
            off = (c * patch + ki) * patch
            out_ref[0, :, :, off:off + patch] = img_ref[c, :, ki, :, :]


def patchify_image(img, num_patches, *, vmem_budget_bytes=24 * 1024 * 1024,
                   flat=False):
    """Pallas equivalent of PatchifyImage(num_patches).forward(img)."""
    C, H, W = img.shape
    grid_n = int(round(num_patches ** 0.5))
    assert grid_n * grid_n == num_patches, "num_patches must be a perfect square"
    assert W % grid_n == 0, "image width must be divisible by sqrt(num_patches)"
    patch = W // grid_n
    assert H >= patch, "image height must be at least one patch tall"

    grid_w = W // patch
    grid_h = H // patch                 # unfold floors the remainder, like PyTorch
    L = grid_h * grid_w                 # == num_patches iff H == W
    Cpp = C * patch * patch

    # Drop ragged bottom rows (like unfold), then split spatial dims so the input
    # DMA hands the kernel (grid_w, patch) tiles.  Contiguous splits -> free.
    img5 = img[:, :grid_h * patch, :].reshape(C, grid_h, patch, grid_w, patch)

    itemsize = jnp.dtype(img.dtype).itemsize
    sub = max(8, 32 // itemsize)        # min sublane tile: f32->8, bf16->16, i8->32
    lane = 128

    def padded_block_bytes(rows):
        # Padded VMEM footprint of one input strip + one output strip, both
        # double-buffered (x2).  Padding-aware (review fix).
        in_elems = C * rows * patch * _round_up(grid_w, sub) * _round_up(patch, lane)
        out_elems = rows * _round_up(grid_w, sub) * _round_up(Cpp, lane)
        return 2 * (in_elems + out_elems) * itemsize

    # Rows of patches per grid step: largest divisor of grid_h that fits the
    # padded VMEM budget while keeping >= 2 grid steps whenever grid_h >= 2 so
    # the "parallel" axis can be sharded across both TensorCores on v7x.
    max_rows = grid_h if grid_h < 2 else max(1, grid_h // 2)
    rows = 1
    for d in range(1, max_rows + 1):
        if grid_h % d == 0 and padded_block_bytes(d) <= vmem_budget_bytes:
            rows = d
    n_steps = grid_h // rows

    vmem_limit = min(64 * 1024 * 1024,                       # safe on v7x (64 MiB)
                     max(32 * 1024 * 1024,
                         padded_block_bytes(rows) + 8 * 1024 * 1024))  # headroom

    kernel = functools.partial(_patchify_kernel, C=C, patch=patch,
                               rows=rows, grid_w=grid_w)

    # TODO(synk): fuse this gather into the downstream patch-embedding GEMM's LHS
    # BlockSpec index_map instead of materializing patches in HBM.
    out = pl.pallas_call(
        kernel,
        out_shape=jax.ShapeDtypeStruct((n_steps, rows, grid_w, Cpp), img.dtype),
        grid=(n_steps,),
        in_specs=[pl.BlockSpec((C, rows, patch, grid_w, patch),
                               lambda s: (0, s, 0, 0, 0))],
        out_specs=pl.BlockSpec((1, rows, grid_w, Cpp),
                               lambda s: (s, 0, 0, 0)),
        compiler_params=pltpu.CompilerParams(
            dimension_semantics=("parallel",),   # strips are independent
            vmem_limit_bytes=vmem_limit,
        ),
        cost_estimate=pl.CostEstimate(
            flops=0, transcendentals=0,
            bytes_accessed=2 * C * grid_h * patch * W * itemsize),
    )(img5)

    out = out.reshape(L, Cpp)                    # free contiguous merge
    if flat:
        return out                               # GEMM-ready (L, C*p*p)
    return out.reshape(L, C, patch, patch)       # module's (L, 3, p, p) view, free


def patchify_reference(img, num_patches):
    """Pure-JAX reference mirroring the PyTorch unfold/view/permute chain."""
    C, H, W = img.shape
    grid_n = int(round(num_patches ** 0.5))
    p = W // grid_n
    gh, gw = H // p, W // p
    x = img[:, :gh * p, :].reshape(C, gh, p, gw, p)
    x = jnp.transpose(x, (1, 3, 0, 2, 4))        # (gh, gw, C, p, p)
    return x.reshape(gh * gw, C, p, p)


if __name__ == "__main__":
    key = jax.random.PRNGKey(0)

    # Case 1: canonical small case: num_patches=4 -> p=8, 2x2 patch grid (2 steps).
    img = jax.random.normal(key, (3, 16, 16), dtype=jnp.float32)
    out = jax.block_until_ready(patchify_image(img, 4))
    ref = patchify_reference(img, 4)
    assert out.shape == (4, 3, 8, 8)
    assert jnp.array_equal(out, ref), "mismatch vs reference (case 1)"

    # Case 2: multi-row strips (rows_per_step=2, n_steps=2) on a 32x32 image.
    img2 = jax.random.normal(jax.random.PRNGKey(0), (3, 32, 32), dtype=jnp.float32)
    out2 = jax.block_until_ready(patchify_image(img2, 16))
    ref2 = patchify_reference(img2, 16)
    assert out2.shape == (16, 3, 8, 8)
    assert jnp.array_equal(out2, ref2), "mismatch vs reference (case 2)"

    # Case 3: tight budget -> rows_per_step=1 (4 steps); also check flat output.
    out3 = jax.block_until_ready(
        patchify_image(img2, 16, vmem_budget_bytes=400 * 1024, flat=True))
    assert out3.shape == (16, 192)
    assert jnp.array_equal(out3.reshape(16, 3, 8, 8), ref2), "mismatch (case 3)"

    # Case 4: rectangular H (unfold-style floor): H=24, W=16 -> 3x2 patch grid.
    img4 = jax.random.normal(jax.random.PRNGKey(0), (3, 24, 16), dtype=jnp.float32)
    out4 = jax.block_until_ready(patchify_image(img4, 4))
    ref4 = patchify_reference(img4, 4)
    assert out4.shape == (6, 3, 8, 8)
    assert jnp.array_equal(out4, ref4), "mismatch vs reference (case 4)"

    print("KERNEL_OK")
</pallas_src>

<mosaic_0001>
module attributes {stable_mosaic.version = 11 : i64} {
  func.func @_patchify_kernel(%arg0: i32, %arg1: memref<3x1x8x2x8xf32, #tpu.memory_space<vmem>>, %arg2: memref<1x1x2x192xf32, #tpu.memory_space<vmem>>) attributes {dimension_semantics = [#tpu.dimension_semantics<parallel>], iteration_bounds = array<i64: 2>, scalar_prefetch = 0 : i64, scratch_operands = 0 : i64, tpu.core_type = #tpu.core_type<tc>, window_params = [{transform_indices = @transform_0, window_bounds = array<i64: 3, 1, 8, 2, 8>}, {transform_indices = @transform_1, window_bounds = array<i64: 1, 1, 2, 192>}]} {
    %c0 = arith.constant 0 : index
    %c0_0 = arith.constant 0 : index
    %c0_1 = arith.constant 0 : index
    %c0_2 = arith.constant 0 : index
    %c0_3 = arith.constant 0 : index
    %0 = vector.load %arg1[%c0, %c0_0, %c0_1, %c0_2, %c0_3] : memref<3x1x8x2x8xf32, #tpu.memory_space<vmem>>, vector<1x1x1x2x8xf32>
    %1 = vector.shape_cast %0 : vector<1x1x1x2x8xf32> to vector<1x2x8xf32>
    %c0_4 = arith.constant 0 : index
    %c0_5 = arith.constant 0 : index
    %c0_6 = arith.constant 0 : index
    %c0_7 = arith.constant 0 : index
    %2 = vector.load %arg2[%c0_4, %c0_5, %c0_6, %c0_7] : memref<1x1x2x192xf32, #tpu.memory_space<vmem>>, vector<1x1x2x8xf32>
    %3 = vector.shape_cast %2 : vector<1x1x2x8xf32> to vector<1x2x8xf32>
    %4 = vector.shape_cast %1 : vector<1x2x8xf32> to vector<1x1x2x8xf32>
    tpu.vector_store %arg2[%c0_4, %c0_5, %c0_6, %c0_7], %4 {strides = array<i32>} : memref<1x1x2x192xf32, #tpu.memory_space<vmem>>, vector<1x1x2x8xf32>,
    %c0_8 = arith.constant 0 : index
    %c0_9 = arith.constant 0 : index
    %c1 = arith.constant 1 : index
    %c0_10 = arith.constant 0 : index
    %c0_11 = arith.constant 0 : index
    %5 = vector.load %arg1[%c0_8, %c0_9, %c1, %c0_10, %c0_11] : memref<3x1x8x2x8xf32, #tpu.memory_space<vmem>>, vector<1x1x1x2x8xf32>
    %6 = vector.shape_cast %5 : vector<1x1x1x2x8xf32> to vector<1x2x8xf32>
    %c0_12 = arith.constant 0 : index
    %c0_13 = arith.constant 0 : index
    %c0_14 = arith.constant 0 : index
    %c8 = arith.constant 8 : index
    %7 = vector.load %arg2[%c0_12, %c0_13, %c0_14, %c8] : memref<1x1x2x192xf32, #tpu.memory_space<vmem>>, vector<1x1x2x8xf32>
    %8 = vector.shape_cast %7 : vector<1x1x2x8xf32> to vector<1x2x8xf32>
    %9 = vector.shape_cast %6 : vector<1x2x8xf32> to vector<1x1x2x8xf32>
    tpu.vector_store %arg2[%c0_12, %c0_13, %c0_14, %c8], %9 {strides = array<i32>} : memref<1x1x2x192xf32, #tpu.memory_space<vmem>>, vector<1x1x2x8xf32>,
    %c0_15 = arith.constant 0 : index
    %c0_16 = arith.constant 0 : index
    %c2 = arith.constant 2 : index
    %c0_17 = arith.constant 0 : index
    %c0_18 = arith.constant 0 : index
    %10 = vector.load %arg1[%c0_15, %c0_16, %c2, %c0_17, %c0_18] : memref<3x1x8x2x8xf32, #tpu.memory_space<vmem>>, vector<1x1x1x2x8xf32>
    %11 = vector.shape_cast %10 : vector<1x1x1x2x8xf32> to vector<1x2x8xf32>
    %c0_19 = arith.constant 0 : index
    %c0_20 = arith.constant 0 : index
    %c0_21 = arith.constant 0 : index
    %c16 = arith.constant 16 : index
    %12 = vector.load %arg2[%c0_19, %c0_20, %c0_21, %c16] : memref<1x1x2x192xf32, #tpu.memory_space<vmem>>, vector<1x1x2x8xf32>
    %13 = vector.shape_cast %12 : vector<1x1x2x8xf32> to vector<1x2x8xf32>
    %14 = vector.shape_cast %11 : vector<1x2x8xf32> to vector<1x1x2x8xf32>
    tpu.vector_store %arg2[%c0_19, %c0_20, %c0_21, %c16], %14 {strides = array<i32>} : memref<1x1x2x192xf32, #tpu.memory_space<vmem>>, vector<1x1x2x8xf32>,
    %c0_22 = arith.constant 0 : index
    %c0_23 = arith.constant 0 : index
    %c3 = arith.constant 3 : index
    %c0_24 = arith.constant 0 : index
    %c0_25 = arith.constant 0 : index
    %15 = vector.load %arg1[%c0_22, %c0_23, %c3, %c0_24, %c0_25] : memref<3x1x8x2x8xf32, #tpu.memory_space<vmem>>, vector<1x1x1x2x8xf32>
    %16 = vector.shape_cast %15 : vector<1x1x1x2x8xf32> to vector<1x2x8xf32>
    %c0_26 = arith.constant 0 : index
    %c0_27 = arith.constant 0 : index
    %c0_28 = arith.constant 0 : index
    %c24 = arith.constant 24 : index
    %17 = vector.load %arg2[%c0_26, %c0_27, %c0_28, %c24] : memref<1x1x2x192xf32, #tpu.memory_space<vmem>>, vector<1x1x2x8xf32>
    %18 = vector.shape_cast %17 : vector<1x1x2x8xf32> to vector<1x2x8xf32>
    %19 = vector.shape_cast %16 : vector<1x2x8xf32> to vector<1x1x2x8xf32>
    tpu.vector_store %arg2[%c0_26, %c0_27, %c0_28, %c24], %19 {strides = array<i32>} : memref<1x1x2x192xf32, #tpu.memory_space<vmem>>, vector<1x1x2x8xf32>,
    %c0_29 = arith.constant 0 : index
    %c0_30 = arith.constant 0 : index
    %c4 = arith.constant 4 : index
    %c0_31 = arith.constant 0 : index
    %c0_32 = arith.constant 0 : index
    %20 = vector.load %arg1[%c0_29, %c0_30, %c4, %c0_31, %c0_32] : memref<3x1x8x2x8xf32, #tpu.memory_space<vmem>>, vector<1x1x1x2x8xf32>
    %21 = vector.shape_cast %20 : vector<1x1x1x2x8xf32> to vector<1x2x8xf32>
    %c0_33 = arith.constant 0 : index
    %c0_34 = arith.constant 0 : index
    %c0_35 = arith.constant 0 : index
    %c32 = arith.constant 32 : index
    %22 = vector.load %arg2[%c0_33, %c0_34, %c0_35, %c32] : memref<1x1x2x192xf32, #tpu.memory_space<vmem>>, vector<1x1x2x8xf32>
    %23 = vector.shape_cast %22 : vector<1x1x2x8xf32> to vector<1x2x8xf32>
    %24 = vector.shape_cast %21 : vector<1x2x8xf32> to vector<1x1x2x8xf32>
    tpu.vector_store %arg2[%c0_33, %c0_34, %c0_35, %c32], %24 {strides = array<i32>} : memref<1x1x2x192xf32, #tpu.memory_space<vmem>>, vector<1x1x2x8xf32>,
    %c0_36 = arith.constant 0 : index
    %c0_37 = arith.constant 0 : index
    %c5 = arith.constant 5 : index
    %c0_38 = arith.constant 0 : index
    %c0_39 = arith.constant 0 : index
    %25 = vector.load %arg1[%c0_36, %c0_37, %c5, %c0_38, %c0_39] : memref<3x1x8x2x8xf32, #tpu.memory_space<vmem>>, vector<1x1x1x2x8xf32>
    %26 = vector.shape_cast %25 : vector<1x1x1x2x8xf32> to vector<1x2x8xf32>
    %c0_40 = arith.constant 0 : index
    %c0_41 = arith.constant 0 : index
    %c0_42 = arith.constant 0 : index
    %c40 = arith.constant 40 : index
    %27 = vector.load %arg2[%c0_40, %c0_41, %c0_42, %c40] : memref<1x1x2x192xf32, #tpu.memory_space<vmem>>, vector<1x1x2x8xf32>
    %28 = vector.shape_cast %27 : vector<1x1x2x8xf32> to vector<1x2x8xf32>
    %29 = vector.shape_cast %26 : vector<1x2x8xf32> to vector<1x1x2x8xf32>
    tpu.vector_store %arg2[%c0_40, %c0_41, %c0_42, %c40], %29 {strides = array<i32>} : memref<1x1x2x192xf32, #tpu.memory_space<vmem>>, vector<1x1x2x8xf32>,
    %c0_43 = arith.constant 0 : index
    %c0_44 = arith.constant 0 : index
    %c6 = arith.constant 6 : index
    %c0_45 = arith.constant 0 : index
    %c0_46 = arith.constant 0 : index
    %30 = vector.load %arg1[%c0_43, %c0_44, %c6, %c0_45, %c0_46] : memref<3x1x8x2x8xf32, #tpu.memory_space<vmem>>, vector<1x1x1x2x8xf32>
    %31 = vector.shape_cast %30 : vector<1x1x1x2x8xf32> to vector<1x2x8xf32>
    %c0_47 = arith.constant 0 : index
    %c0_48 = arith.constant 0 : index
    %c0_49 = arith.constant 0 : index
    %c48 = arith.constant 48 : index
    %32 = vector.load %arg2[%c0_47, %c0_48, %c0_49, %c48] : memref<1x1x2x192xf32, #tpu.memory_space<vmem>>, vector<1x1x2x8xf32>
    %33 = vector.shape_cast %32 : vector<1x1x2x8xf32> to vector<1x2x8xf32>
    %34 = vector.shape_cast %31 : vector<1x2x8xf32> to vector<1x1x2x8xf32>
    tpu.vector_store %arg2[%c0_47, %c0_48, %c0_49, %c48], %34 {strides = array<i32>} : memref<1x1x2x192xf32, #tpu.memory_space<vmem>>, vector<1x1x2x8xf32>,
    %c0_50 = arith.constant 0 : index
    %c0_51 = arith.constant 0 : index
    %c7 = arith.constant 7 : index
    %c0_52 = arith.constant 0 : index
    %c0_53 = arith.constant 0 : index
    %35 = vector.load %arg1[%c0_50, %c0_51, %c7, %c0_52, %c0_53] : memref<3x1x8x2x8xf32, #tpu.memory_space<vmem>>, vector<1x1x1x2x8xf32>
    %36 = vector.shape_cast %35 : vector<1x1x1x2x8xf32> to vector<1x2x8xf32>
    %c0_54 = arith.constant 0 : index
    %c0_55 = arith.constant 0 : index
    %c0_56 = arith.constant 0 : index
    %c56 = arith.constant 56 : index
    %37 = vector.load %arg2[%c0_54, %c0_55, %c0_56, %c56] : memref<1x1x2x192xf32, #tpu.memory_space<vmem>>, vector<1x1x2x8xf32>
    %38 = vector.shape_cast %37 : vector<1x1x2x8xf32> to vector<1x2x8xf32>
    %39 = vector.shape_cast %36 : vector<1x2x8xf32> to vector<1x1x2x8xf32>
    tpu.vector_store %arg2[%c0_54, %c0_55, %c0_56, %c56], %39 {strides = array<i32>} : memref<1x1x2x192xf32, #tpu.memory_space<vmem>>, vector<1x1x2x8xf32>,
    %c1_57 = arith.constant 1 : index
    %c0_58 = arith.constant 0 : index
    %c0_59 = arith.constant 0 : index
    %c0_60 = arith.constant 0 : index
    %c0_61 = arith.constant 0 : index
    %40 = vector.load %arg1[%c1_57, %c0_58, %c0_59, %c0_60, %c0_61] : memref<3x1x8x2x8xf32, #tpu.memory_space<vmem>>, vector<1x1x1x2x8xf32>
    %41 = vector.shape_cast %40 : vector<1x1x1x2x8xf32> to vector<1x2x8xf32>
    %c0_62 = arith.constant 0 : index
    %c0_63 = arith.constant 0 : index
    %c0_64 = arith.constant 0 : index
    %c64 = arith.constant 64 : index
    %42 = vector.load %arg2[%c0_62, %c0_63, %c0_64, %c64] : memref<1x1x2x192xf32, #tpu.memory_space<vmem>>, vector<1x1x2x8xf32>
    %43 = vector.shape_cast %42 : vector<1x1x2x8xf32> to vector<1x2x8xf32>
    %44 = vector.shape_cast %41 : vector<1x2x8xf32> to vector<1x1x2x8xf32>
    tpu.vector_store %arg2[%c0_62, %c0_63, %c0_64, %c64], %44 {strides = array<i32>} : memref<1x1x2x192xf32, #tpu.memory_space<vmem>>, vector<1x1x2x8xf32>,
    %c1_65 = arith.constant 1 : index
    %c0_66 = arith.constant 0 : index
    %c1_67 = arith.constant 1 : index
    %c0_68 = arith.constant 0 : index
    %c0_69 = arith.constant 0 : index
    %45 = vector.load %arg1[%c1_65, %c0_66, %c1_67, %c0_68, %c0_69] : memref<3x1x8x2x8xf32, #tpu.memory_space<vmem>>, vector<1x1x1x2x8xf32>
    %46 = vector.shape_cast %45 : vector<1x1x1x2x8xf32> to vector<1x2x8xf32>
    %c0_70 = arith.constant 0 : index
    %c0_71 = arith.constant 0 : index
    %c0_72 = arith.constant 0 : index
    %c72 = arith.constant 72 : index
    %47 = vector.load %arg2[%c0_70, %c0_71, %c0_72, %c72] : memref<1x1x2x192xf32, #tpu.memory_space<vmem>>, vector<1x1x2x8xf32>
    %48 = vector.shape_cast %47 : vector<1x1x2x8xf32> to vector<1x2x8xf32>
    %49 = vector.shape_cast %46 : vector<1x2x8xf32> to vector<1x1x2x8xf32>
    tpu.vector_store %arg2[%c0_70, %c0_71, %c0_72, %c72], %49 {strides = array<i32>} : memref<1x1x2x192xf32, #tpu.memory_space<vmem>>, vector<1x1x2x8xf32>,
    %c1_73 = arith.constant 1 : index
    %c0_74 = arith.constant 0 : index
    %c2_75 = arith.constant 2 : index
    %c0_76 = arith.constant 0 : index
    %c0_77 = arith.constant 0 : index
    %50 = vector.load %arg1[%c1_73, %c0_74, %c2_75, %c0_76, %c0_77] : memref<3x1x8x2x8xf32, #tpu.memory_space<vmem>>, vector<1x1x1x2x8xf32>
    %51 = vector.shape_cast %50 : vector<1x1x1x2x8xf32> to vector<1x2x8xf32>
    %c0_78 = arith.constant 0 : index
    %c0_79 = arith.constant 0 : index
    %c0_80 = arith.constant 0 : index
    %c80 = arith.constant 80 : index
    %52 = vector.load %arg2[%c0_78, %c0_79, %c0_80, %c80] : memref<1x1x2x192xf32, #tpu.memory_space<vmem>>, vector<1x1x2x8xf32>
    %53 = vector.shape_cast %52 : vector<1x1x2x8xf32> to vector<1x2x8xf32>
    %54 = vector.shape_cast %51 : vector<1x2x8xf32> to vector<1x1x2x8xf32>
    tpu.vector_store %arg2[%c0_78, %c0_79, %c0_80, %c80], %54 {strides = array<i32>} : memref<1x1x2x192xf32, #tpu.memory_space<vmem>>, vector<1x1x2x8xf32>,
    %c1_81 = arith.constant 1 : index
    %c0_82 = arith.constant 0 : index
    %c3_83 = arith.constant 3 : index
    %c0_84 = arith.constant 0 : index
    %c0_85 = arith.constant 0 : index
    %55 = vector.load %arg1[%c1_81, %c0_82, %c3_83, %c0_84, %c0_85] : memref<3x1x8x2x8xf32, #tpu.memory_space<vmem>>, vector<1x1x1x2x8xf32>
    %56 = vector.shape_cast %55 : vector<1x1x1x2x8xf32> to vector<1x2x8xf32>
    %c0_86 = arith.constant 0 : index
    %c0_87 = arith.constant 0 : index
    %c0_88 = arith.constant 0 : index
    %c88 = arith.constant 88 : index
    %57 = vector.load %arg2[%c0_86, %c0_87, %c0_88, %c88] : memref<1x1x2x192xf32, #tpu.memory_space<vmem>>, vector<1x1x2x8xf32>
    %58 = vector.shape_cast %57 : vector<1x1x2x8xf32> to vector<1x2x8xf32>
    %59 = vector.shape_cast %56 : vector<1x2x8xf32> to vector<1x1x2x8xf32>
    tpu.vector_store %arg2[%c0_86, %c0_87, %c0_88, %c88], %59 {strides = array<i32>} : memref<1x1x2x192xf32, #tpu.memory_space<vmem>>, vector<1x1x2x8xf32>,
    %c1_89 = arith.constant 1 : index
    %c0_90 = arith.constant 0 : index
    %c4_91 = arith.constant 4 : index
    %c0_92 = arith.constant 0 : index
    %c0_93 = arith.constant 0 : index
    %60 = vector.load %arg1[%c1_89, %c0_90, %c4_91, %c0_92, %c0_93] : memref<3x1x8x2x8xf32, #tpu.memory_space<vmem>>, vector<1x1x1x2x8xf32>
    %61 = vector.shape_cast %60 : vector<1x1x1x2x8xf32> to vector<1x2x8xf32>
    %c0_94 = arith.constant 0 : index
    %c0_95 = arith.constant 0 : index
    %c0_96 = arith.constant 0 : index
    %c96 = arith.constant 96 : index
    %62 = vector.load %arg2[%c0_94, %c0_95, %c0_96, %c96] : memref<1x1x2x192xf32, #tpu.memory_space<vmem>>, vector<1x1x2x8xf32>
    %63 = vector.shape_cast %62 : vector<1x1x2x8xf32> to vector<1x2x8xf32>
    %64 = vector.shape_cast %61 : vector<1x2x8xf32> to vector<1x1x2x8xf32>
    tpu.vector_store %arg2[%c0_94, %c0_95, %c0_96, %c96], %64 {strides = array<i32>} : memref<1x1x2x192xf32, #tpu.memory_space<vmem>>, vector<1x1x2x8xf32>,
    %c1_97 = arith.constant 1 : index
    %c0_98 = arith.constant 0 : index
    %c5_99 = arith.constant 5 : index
    %c0_100 = arith.constant 0 : index
    %c0_101 = arith.constant 0 : index
    %65 = vector.load %arg1[%c1_97, %c0_98, %c5_99, %c0_100, %c0_101] : memref<3x1x8x2x8xf32, #tpu.memory_space<vmem>>, vector<1x1x1x2x8xf32>
    %66 = vector.shape_cast %65 : vector<1x1x1x2x8xf32> to vector<1x2x8xf32>
    %c0_102 = arith.constant 0 : index
    %c0_103 = arith.constant 0 : index
    %c0_104 = arith.constant 0 : index
    %c104 = arith.constant 104 : index
    %67 = vector.load %arg2[%c0_102, %c0_103, %c0_104, %c104] : memref<1x1x2x192xf32, #tpu.memory_space<vmem>>, vector<1x1x2x8xf32>
    %68 = vector.shape_cast %67 : vector<1x1x2x8xf32> to vector<1x2x8xf32>
    %69 = vector.shape_cast %66 : vector<1x2x8xf32> to vector<1x1x2x8xf32>
    tpu.vector_store %arg2[%c0_102, %c0_103, %c0_104, %c104], %69 {strides = array<i32>} : memref<1x1x2x192xf32, #tpu.memory_space<vmem>>, vector<1x1x2x8xf32>,
    %c1_105 = arith.constant 1 : index
    %c0_106 = arith.constant 0 : index
    %c6_107 = arith.constant 6 : index
    %c0_108 = arith.constant 0 : index
    %c0_109 = arith.constant 0 : index
    %70 = vector.load %arg1[%c1_105, %c0_106, %c6_107, %c0_108, %c0_109] : memref<3x1x8x2x8xf32, #tpu.memory_space<vmem>>, vector<1x1x1x2x8xf32>
    %71 = vector.shape_cast %70 : vector<1x1x1x2x8xf32> to vector<1x2x8xf32>
    %c0_110 = arith.constant 0 : index
    %c0_111 = arith.constant 0 : index
    %c0_112 = arith.constant 0 : index
    %c112 = arith.constant 112 : index
    %72 = vector.load %arg2[%c0_110, %c0_111, %c0_112, %c112] : memref<1x1x2x192xf32, #tpu.memory_space<vmem>>, vector<1x1x2x8xf32>
    %73 = vector.shape_cast %72 : vector<1x1x2x8xf32> to vector<1x2x8xf32>
    %74 = vector.shape_cast %71 : vector<1x2x8xf32> to vector<1x1x2x8xf32>
    tpu.vector_store %arg2[%c0_110, %c0_111, %c0_112, %c112], %74 {strides = array<i32>} : memref<1x1x2x192xf32, #tpu.memory_space<vmem>>, vector<1x1x2x8xf32>,
    %c1_113 = arith.constant 1 : index
    %c0_114 = arith.constant 0 : index
    %c7_115 = arith.constant 7 : index
    %c0_116 = arith.constant 0 : index
    %c0_117 = arith.constant 0 : index
    %75 = vector.load %arg1[%c1_113, %c0_114, %c7_115, %c0_116, %c0_117] : memref<3x1x8x2x8xf32, #tpu.memory_space<vmem>>, vector<1x1x1x2x8xf32>
    %76 = vector.shape_cast %75 : vector<1x1x1x2x8xf32> to vector<1x2x8xf32>
    %c0_118 = arith.constant 0 : index
    %c0_119 = arith.constant 0 : index
    %c0_120 = arith.constant 0 : index
    %c120 = arith.constant 120 : index
    %77 = vector.load %arg2[%c0_118, %c0_119, %c0_120, %c120] : memref<1x1x2x192xf32, #tpu.memory_space<vmem>>, vector<1x1x2x8xf32>
    %78 = vector.shape_cast %77 : vector<1x1x2x8xf32> to vector<1x2x8xf32>
    %79 = vector.shape_cast %76 : vector<1x2x8xf32> to vector<1x1x2x8xf32>
    tpu.vector_store %arg2[%c0_118, %c0_119, %c0_120, %c120], %79 {strides = array<i32>} : memref<1x1x2x192xf32, #tpu.memory_space<vmem>>, vector<1x1x2x8xf32>,
    %c2_121 = arith.constant 2 : index
    %c0_122 = arith.constant 0 : index
    %c0_123 = arith.constant 0 : index
    %c0_124 = arith.constant 0 : index
    %c0_125 = arith.constant 0 : index
    %80 = vector.load %arg1[%c2_121, %c0_122, %c0_123, %c0_124, %c0_125] : memref<3x1x8x2x8xf32, #tpu.memory_space<vmem>>, vector<1x1x1x2x8xf32>
    %81 = vector.shape_cast %80 : vector<1x1x1x2x8xf32> to vector<1x2x8xf32>
    %c0_126 = arith.constant 0 : index
    %c0_127 = arith.constant 0 : index
    %c0_128 = arith.constant 0 : index
    %c128 = arith.constant 128 : index
    %82 = vector.load %arg2[%c0_126, %c0_127, %c0_128, %c128] : memref<1x1x2x192xf32, #tpu.memory_space<vmem>>, vector<1x1x2x8xf32>
    %83 = vector.shape_cast %82 : vector<1x1x2x8xf32> to vector<1x2x8xf32>
    %84 = vector.shape_cast %81 : vector<1x2x8xf32> to vector<1x1x2x8xf32>
    tpu.vector_store %arg2[%c0_126, %c0_127, %c0_128, %c128], %84 {strides = array<i32>} : memref<1x1x2x192xf32, #tpu.memory_space<vmem>>, vector<1x1x2x8xf32>,
    %c2_129 = arith.constant 2 : index
    %c0_130 = arith.constant 0 : index
    %c1_131 = arith.constant 1 : index
    %c0_132 = arith.constant 0 : index
    %c0_133 = arith.constant 0 : index
    %85 = vector.load %arg1[%c2_129, %c0_130, %c1_131, %c0_132, %c0_133] : memref<3x1x8x2x8xf32, #tpu.memory_space<vmem>>, vector<1x1x1x2x8xf32>
    %86 = vector.shape_cast %85 : vector<1x1x1x2x8xf32> to vector<1x2x8xf32>
    %c0_134 = arith.constant 0 : index
    %c0_135 = arith.constant 0 : index
    %c0_136 = arith.constant 0 : index
    %c136 = arith.constant 136 : index
    %87 = vector.load %arg2[%c0_134, %c0_135, %c0_136, %c136] : memref<1x1x2x192xf32, #tpu.memory_space<vmem>>, vector<1x1x2x8xf32>
    %88 = vector.shape_cast %87 : vector<1x1x2x8xf32> to vector<1x2x8xf32>
    %89 = vector.shape_cast %86 : vector<1x2x8xf32> to vector<1x1x2x8xf32>
    tpu.vector_store %arg2[%c0_134, %c0_135, %c0_136, %c136], %89 {strides = array<i32>} : memref<1x1x2x192xf32, #tpu.memory_space<vmem>>, vector<1x1x2x8xf32>,
    %c2_137 = arith.constant 2 : index
    %c0_138 = arith.constant 0 : index
    %c2_139 = arith.constant 2 : index
    %c0_140 = arith.constant 0 : index
    %c0_141 = arith.constant 0 : index
    %90 = vector.load %arg1[%c2_137, %c0_138, %c2_139, %c0_140, %c0_141] : memref<3x1x8x2x8xf32, #tpu.memory_space<vmem>>, vector<1x1x1x2x8xf32>
    %91 = vector.shape_cast %90 : vector<1x1x1x2x8xf32> to vector<1x2x8xf32>
    %c0_142 = arith.constant 0 : index
    %c0_143 = arith.constant 0 : index
    %c0_144 = arith.constant 0 : index
    %c144 = arith.constant 144 : index
    %92 = vector.load %arg2[%c0_142, %c0_143, %c0_144, %c144] : memref<1x1x2x192xf32, #tpu.memory_space<vmem>>, vector<1x1x2x8xf32>
    %93 = vector.shape_cast %92 : vector<1x1x2x8xf32> to vector<1x2x8xf32>
    %94 = vector.shape_cast %91 : vector<1x2x8xf32> to vector<1x1x2x8xf32>
    tpu.vector_store %arg2[%c0_142, %c0_143, %c0_144, %c144], %94 {strides = array<i32>} : memref<1x1x2x192xf32, #tpu.memory_space<vmem>>, vector<1x1x2x8xf32>,
    %c2_145 = arith.constant 2 : index
    %c0_146 = arith.constant 0 : index
    %c3_147 = arith.constant 3 : index
    %c0_148 = arith.constant 0 : index
    %c0_149 = arith.constant 0 : index
    %95 = vector.load %arg1[%c2_145, %c0_146, %c3_147, %c0_148, %c0_149] : memref<3x1x8x2x8xf32, #tpu.memory_space<vmem>>, vector<1x1x1x2x8xf32>
    %96 = vector.shape_cast %95 : vector<1x1x1x2x8xf32> to vector<1x2x8xf32>
    %c0_150 = arith.constant 0 : index
    %c0_151 = arith.constant 0 : index
    %c0_152 = arith.constant 0 : index
    %c152 = arith.constant 152 : index
    %97 = vector.load %arg2[%c0_150, %c0_151, %c0_152, %c152] : memref<1x1x2x192xf32, #tpu.memory_space<vmem>>, vector<1x1x2x8xf32>
    %98 = vector.shape_cast %97 : vector<1x1x2x8xf32> to vector<1x2x8xf32>
    %99 = vector.shape_cast %96 : vector<1x2x8xf32> to vector<1x1x2x8xf32>
    tpu.vector_store %arg2[%c0_150, %c0_151, %c0_152, %c152], %99 {strides = array<i32>} : memref<1x1x2x192xf32, #tpu.memory_space<vmem>>, vector<1x1x2x8xf32>,
    %c2_153 = arith.constant 2 : index
    %c0_154 = arith.constant 0 : index
    %c4_155 = arith.constant 4 : index
    %c0_156 = arith.constant 0 : index
    %c0_157 = arith.constant 0 : index
    %100 = vector.load %arg1[%c2_153, %c0_154, %c4_155, %c0_156, %c0_157] : memref<3x1x8x2x8xf32, #tpu.memory_space<vmem>>, vector<1x1x1x2x8xf32>
    %101 = vector.shape_cast %100 : vector<1x1x1x2x8xf32> to vector<1x2x8xf32>
    %c0_158 = arith.constant 0 : index
    %c0_159 = arith.constant 0 : index
    %c0_160 = arith.constant 0 : index
    %c160 = arith.constant 160 : index
    %102 = vector.load %arg2[%c0_158, %c0_159, %c0_160, %c160] : memref<1x1x2x192xf32, #tpu.memory_space<vmem>>, vector<1x1x2x8xf32>
    %103 = vector.shape_cast %102 : vector<1x1x2x8xf32> to vector<1x2x8xf32>
    %104 = vector.shape_cast %101 : vector<1x2x8xf32> to vector<1x1x2x8xf32>
    tpu.vector_store %arg2[%c0_158, %c0_159, %c0_160, %c160], %104 {strides = array<i32>} : memref<1x1x2x192xf32, #tpu.memory_space<vmem>>, vector<1x1x2x8xf32>,
    %c2_161 = arith.constant 2 : index
    %c0_162 = arith.constant 0 : index
    %c5_163 = arith.constant 5 : index
    %c0_164 = arith.constant 0 : index
    %c0_165 = arith.constant 0 : index
    %105 = vector.load %arg1[%c2_161, %c0_162, %c5_163, %c0_164, %c0_165] : memref<3x1x8x2x8xf32, #tpu.memory_space<vmem>>, vector<1x1x1x2x8xf32>
    %106 = vector.shape_cast %105 : vector<1x1x1x2x8xf32> to vector<1x2x8xf32>
    %c0_166 = arith.constant 0 : index
    %c0_167 = arith.constant 0 : index
    %c0_168 = arith.constant 0 : index
    %c168 = arith.constant 168 : index
    %107 = vector.load %arg2[%c0_166, %c0_167, %c0_168, %c168] : memref<1x1x2x192xf32, #tpu.memory_space<vmem>>, vector<1x1x2x8xf32>
    %108 = vector.shape_cast %107 : vector<1x1x2x8xf32> to vector<1x2x8xf32>
    %109 = vector.shape_cast %106 : vector<1x2x8xf32> to vector<1x1x2x8xf32>
    tpu.vector_store %arg2[%c0_166, %c0_167, %c0_168, %c168], %109 {strides = array<i32>} : memref<1x1x2x192xf32, #tpu.memory_space<vmem>>, vector<1x1x2x8xf32>,
    %c2_169 = arith.constant 2 : index
    %c0_170 = arith.constant 0 : index
    %c6_171 = arith.constant 6 : index
    %c0_172 = arith.constant 0 : index
    %c0_173 = arith.constant 0 : index
    %110 = vector.load %arg1[%c2_169, %c0_170, %c6_171, %c0_172, %c0_173] : memref<3x1x8x2x8xf32, #tpu.memory_space<vmem>>, vector<1x1x1x2x8xf32>
    %111 = vector.shape_cast %110 : vector<1x1x1x2x8xf32> to vector<1x2x8xf32>
    %c0_174 = arith.constant 0 : index
    %c0_175 = arith.constant 0 : index
    %c0_176 = arith.constant 0 : index
    %c176 = arith.constant 176 : index
    %112 = vector.load %arg2[%c0_174, %c0_175, %c0_176, %c176] : memref<1x1x2x192xf32, #tpu.memory_space<vmem>>, vector<1x1x2x8xf32>
    %113 = vector.shape_cast %112 : vector<1x1x2x8xf32> to vector<1x2x8xf32>
    %114 = vector.shape_cast %111 : vector<1x2x8xf32> to vector<1x1x2x8xf32>
    tpu.vector_store %arg2[%c0_174, %c0_175, %c0_176, %c176], %114 {strides = array<i32>} : memref<1x1x2x192xf32, #tpu.memory_space<vmem>>, vector<1x1x2x8xf32>,
    %c2_177 = arith.constant 2 : index
    %c0_178 = arith.constant 0 : index
    %c7_179 = arith.constant 7 : index
    %c0_180 = arith.constant 0 : index
    %c0_181 = arith.constant 0 : index
    %115 = vector.load %arg1[%c2_177, %c0_178, %c7_179, %c0_180, %c0_181] : memref<3x1x8x2x8xf32, #tpu.memory_space<vmem>>, vector<1x1x1x2x8xf32>
    %116 = vector.shape_cast %115 : vector<1x1x1x2x8xf32> to vector<1x2x8xf32>
    %c0_182 = arith.constant 0 : index
    %c0_183 = arith.constant 0 : index
    %c0_184 = arith.constant 0 : index
    %c184 = arith.constant 184 : index
    %117 = vector.load %arg2[%c0_182, %c0_183, %c0_184, %c184] : memref<1x1x2x192xf32, #tpu.memory_space<vmem>>, vector<1x1x2x8xf32>
    %118 = vector.shape_cast %117 : vector<1x1x2x8xf32> to vector<1x2x8xf32>
    %119 = vector.shape_cast %116 : vector<1x2x8xf32> to vector<1x1x2x8xf32>
    tpu.vector_store %arg2[%c0_182, %c0_183, %c0_184, %c184], %119 {strides = array<i32>} : memref<1x1x2x192xf32, #tpu.memory_space<vmem>>, vector<1x1x2x8xf32>,
    return
  }
  func.func @transform_0(%arg0: i32) -> (i32, i32, i32, i32, i32) {
    %c0_i32 = arith.constant 0 : i32
    %c0_i32_0 = arith.constant 0 : i32
    %c0_i32_1 = arith.constant 0 : i32
    %c0_i32_2 = arith.constant 0 : i32
    %c0_i32_3 = arith.constant 0 : i32
    return %c0_i32, %arg0, %c0_i32_0, %c0_i32_1, %c0_i32_2 : i32, i32, i32, i32, i32
  }
  func.func @transform_1(%arg0: i32) -> (i32, i32, i32, i32) {
    %c0_i32 = arith.constant 0 : i32
    %c0_i32_0 = arith.constant 0 : i32
    %c0_i32_1 = arith.constant 0 : i32
    %c0_i32_2 = arith.constant 0 : i32
    return %arg0, %c0_i32, %c0_i32_0, %c0_i32_1 : i32, i32, i32, i32
  }
}

</mosaic_0001>

<bundles_post_ra>
// kernel: tpu_custom_call.1
= control target key start
LH: loop header
LB: loop body
LE: loop exit
PB: predicated region body
PF: predicated region fallthrough
CT: control target
= control target key end

     0   :  { %6 = vsyncpa [#allocation3], 0  ;;  %s1023_s0 = inlined_call_operand.hbm [shape: f32[3,2,8,2,8], index: 0, kind: input, shape index: {}]   ;;  %s1024_s1 = inlined_call_operand.hbm [shape: f32[2,1,2,192], index: 1, kind: output, shape index: {}]  }
   0x1   :  { %8 = vsyncpa [#allocation3 + $0x1], 0 }
   0x2   :  { %9 = vsyncpa [#allocation4], 0 }
   0x3   :  { %11 = vsyncpa [#allocation4 + $0x1], 0  ;;  %s806_s6 = smov 0   ;;  %s808_s7 = smov 0  }
   0x4   :  { %s810_s8 = smov 0   ;;  %s812_s9 = smov 0  }
   0x5 LB: > { %s827_s10 = sadd.s32 4294967295, %s772_s9   ;;  %s574_s11 = sadd.s32 4294967294, %s772_s9   ;;  %s772_s9 = sphi %s812_s9, %s1032_s9   ;;  %s768_s8 = sphi %s810_s8, %s1031_s8   ;;  %s764_s7 = sphi %s808_s7, %s1030_s7   ;;  %s760_s6 = sphi %s806_s6, %s1029_s6  }
   0x6   : > { %s831_s12 = sadd.s32 1, %s772_s9   ;;  %s24_s13 = sadd.s32 1, %s768_s8 }
   0x7   : > { %s21_s14 = ssub.s32 %s772_s9, %s831_s12  ;;  %p31_p0 = scmp.ne.s32.totalorder %s768_s8, %s764_s7 }
   0x8   : > { %p22_p1 = scmp.eq.s32.totalorder %s21_s14, 0  ;;  %p32_p2 = scmp.eq.s32.totalorder %s772_s9, 0 }
   0x9   : > { %p37_p3 = scmp.ne.s32.totalorder %s764_s7, %s760_s6  ;;  %p38_p4 = scmp.eq.s32.totalorder %s827_s10, 0 }
   0xa   : > { %s843_s15 = scalar_select %p22_p1, %s768_s8, %s24_s13  }
   0xb   : > { %p845_p5 = por %p32_p2, %p31_p0  ;;  %p849_p6 = por %p38_p4, %p37_p3 }
   0xc   : > { %p61_p7 = scmp.eq.s32.totalorder %s827_s10, 1  ;;  %p67_p8 = scmp.eq.s32.totalorder %s574_s11, 1 }
   0xd   : > { %p576_p11 = scmp.ge.s32.totalorder %s772_s9, 2 }
   0xe   : > { %p854_p9 = por %p61_p7, %p31_p0  ;;  %p858_p10 = por %p67_p8, %p37_p3 }
   0xf   : > { %83 = sbr.rel (%p576_p11) target bundleno = 36 (0x24), region = 16 }
  0x16   : > { %s87_s20 = sand.u32 1, %s768_s8   ;;  %s633_s22 = sshll.u32 %s772_s9, 8 }
  0x17   : > { %s635_s21 = smul.u32 48, %s87_s20  ;;  %s774_s23 = smov 512  }
  0x18   : > { %638 = sst [smem:[#allocation7]] (%p845_p5), %s774_s23  ;;  %s97_s27 = scalar_lea.hbm %s1023_s0, %s633_s22 }
  0x19   : > { %s637_s24 = scalar_select %p845_p5, [#allocation0], [#allocation8] }
  0x1a   : > { %s91_s29 = scalar_lea.vmem [#allocation2], %s635_s21  ;;  %s775_s2 = smov 256  }
  0x1b   : > { %s102_s28 = sld [smem:[%s637_s24]]   ;;  %s110_s30 = sshll.u32 %s91_s29, 4  ;;  %s111_s30 = int_to_ptr.vmem [resolvable:$true] %s110_s30 }
  0x1c   : > { %639 = sst [smem:[#allocation7 + $0x1]] (%p845_p5), %s775_s2  ;;  %s776_s3 = smov 8  }
  0x1d   : > { %640 = sst [smem:[#allocation7 + $0x2]] (%p845_p5), %s776_s3  ;;  %s777_s4 = smov 32  }
  0x1e   : > { %641 = sst [smem:[#allocation7 + $0x3]] (%p845_p5), %s777_s4  ;;  %s778_s5 = smov 2  }
  0x1f   : > { %642 = sst [smem:[#allocation7 + $0x4]] (%p845_p5), %s777_s4  ;;  %s88_s14 = scalar_lea.sflag [#allocation3], %s87_s20 }
  0x20   : > { %643 = sst [smem:[#allocation7 + $0x5]] (%p845_p5), %s778_s5  ;;  %s779_s21 = smov [#allocation6]  }
  0x21   : > { %s579_s11 = sshll.u32 %s102_s28, 26 }
  0x22   : > { %s580_s13 = sadd.s32 134217728, %s579_s11 }
  0x23   : > { %644 = dma.general (%p845_p5), %s97_s27, 768, %s111_s30, %s88_s14, %s779_s21, [#allocation7], %s580_s13, 0  }
  0x24 PF: > { %p581_p12 = scmp.ge.s32.totalorder %s772_s9, 1  ;;  %p131_p13 = scmp.lt.s32.totalorder %s772_s9, 3 }
  0x26   : > { %p132_p0 = pnand %p581_p12, %p131_p13 }
  0x27   : > { %s889_s22 = sand.u32 (!%p132_p0), 1, %s764_s7  }
  0x28   : > { %135 = sbr.rel (%p132_p0) target bundleno = 220 (0xdc), region = 24  ;;  %s138_s24 = scalar_lea.sflag (!%p132_p0), [#allocation3], %s889_s22 }
  0x29   : > { %s636_s23 = smul.u32 (!%p132_p0), 48, %s889_s22 }
  0x2b   : > { %s893_s25 = scalar_lea.vmem (!%p132_p0), [#allocation2], %s636_s23 }
  0x2f   : > { %751 = dma.done.wait (%p849_p6), %s138_s24, 768  }
  0x30   : > { %753 = vsyncadd (%p849_p6), %s138_s24, 4294966528  ;;  %vm161_vm0 = vcmask 58368   ;;  %v588_v0 = vld.sshfl [vmem:[%s893_s25 + $0x6] sm:$0x3 pattern:$0x76325410] }
  0x31   : > { %s582_s16 = sshll.u32 %s889_s22, 2  ;;  %s780_s20 = smov 24   ;;  %v584_v1 = vld.sshfl [vmem:[%s893_s25 + $0x2] sm:$0x3 pattern:$0x76325410] }
  0x32   : > { %203 = vrot.lane.b32.xlu1 %v588_v0, %s780_s20  ;;  %s781_s26 = smov 8   ;;  %v590_v2 = vld.sshfl [vmem:[%s893_s25 + $0x8] sm:$0x3 pattern:$0x76325410]  ;;  %s906_s17 = scalar_lea.vmem [#allocation5], %s582_s16 }
  0x33   : > { %173 = vrot.lane.b32.xlu0 %v584_v1, %s781_s26  ;;  %v160_v3 = vld [vmem:[%s893_s25] sm:$0x3]  ;;  %v586_v4 = vld.sshfl [vmem:[%s893_s25 + $0x4] sm:$0x3 pattern:$0x76325410] }
  0x34   : > { %162 = vst.msk [vmem:[%s906_s17] sm:$0x3] %vm161_vm0, %v160_v3  ;;  %v613_v5 = vld [vmem:[%s893_s25 + $0x20] sm:$0x3]  ;;  %s782_s27 = smov 32   ;;  %s783_s28 = smov 16  }
  0x35   : > { %390 = vst.msk [vmem:[%s906_s17 + $0x2] sm:$0x3] %vm161_vm0, %v613_v5  ;;  %v594_v6 = vld.sshfl [vmem:[%s893_s25 + $0xc] sm:$0x3 pattern:$0x76325410] }
  0x36   : > { %218 = vrot.lane.b32.xlu1 %v590_v2, %s782_s27  ;;  %v592_v7 = vld.sshfl [vmem:[%s893_s25 + $0xa] sm:$0x3 pattern:$0x76325410]  ;;  %s784_s29 = smov 48   ;;  %s785_s30 = smov 40  }
  0x37   : > { %188 = vrot.lane.b32.xlu0 %v586_v4, %s783_s28  ;;  %v598_v8 = vld.sshfl [vmem:[%s893_s25 + $0x10] sm:$0x3 pattern:$0x76325410]  ;;  %s786_s2 = smov 64   ;;  %s787_s3 = smov 56  }
  0x38   : > { %v596_v9 = vld.sshfl [vmem:[%s893_s25 + $0xe] sm:$0x3 pattern:$0x76325410]  ;;  %s788_s4 = smov 72   ;;  %s789_s5 = smov 80  }
  0x39   : > { %v615_v10 = vld.sshfl [vmem:[%s893_s25 + $0x22] sm:$0x3 pattern:$0x76325410]  ;;  %s790_s11 = smov 88   ;;  %s791_s13 = smov 96  }
  0x3a   : > { %248 = vrot.lane.b32.xlu1 %v594_v6, %s784_s29  ;;  %v600_v11 = vld.sshfl [vmem:[%s893_s25 + $0x12] sm:$0x3 pattern:$0x76325410]  ;;  %s792_s14 = smov 104   ;;  %s793_s21 = smov 112  }
  0x3b   : > { %233 = vrot.lane.b32.xlu0 %v592_v7, %s785_s30  ;;  %v617_v12 = vld.sshfl [vmem:[%s893_s25 + $0x24] sm:$0x3 pattern:$0x76325410]  ;;  %s794_s23 = smov 120   ;;  %vm176_vm1 = vcmask 123968  }
  0x3c   : > { %v602_v13 = vld.sshfl [vmem:[%s893_s25 + $0x14] sm:$0x3 pattern:$0x76325410]  ;;  %vm191_vm2 = vcmask 189568   ;;  %vm206_vm3 = vcmask 255168  }
  0x3d   : > { %v619_v14 = vld.sshfl [vmem:[%s893_s25 + $0x26] sm:$0x3 pattern:$0x76325410]  ;;  %vm221_vm4 = vcmask 320768   ;;  %vm236_vm5 = vcmask 386368  }
  0x3e   : > { %278 = vrot.lane.b32.xlu1 %v598_v8, %s786_s2  ;;  %v604_v15 = vld.sshfl [vmem:[%s893_s25 + $0x16] sm:$0x3 pattern:$0x76325410]  ;;  %vm251_vm6 = vcmask 451968   ;;  %vm266_vm7 = vcmask 517568  }
  0x3f   : > { %263 = vrot.lane.b32.xlu0 %v596_v9, %s787_s3  ;;  %v621_v16 = vld.sshfl [vmem:[%s893_s25 + $0x28] sm:$0x3 pattern:$0x76325410]  ;;  %vm281_vm8 = vcmask 583168   ;;  %vm296_vm9 = vcmask 648768  }
  0x40   : > { %v606_v17 = vld.sshfl [vmem:[%s893_s25 + $0x18] sm:$0x3 pattern:$0x76325410]  ;;  %vm311_vm10 = vcmask 714368   ;;  %vm326_vm11 = vcmask 779968  }
  0x41   : > { %v623_v18 = vld.sshfl [vmem:[%s893_s25 + $0x2a] sm:$0x3 pattern:$0x76325410]  ;;  %vm341_vm12 = vcmask 845568   ;;  %vm356_vm13 = vcmask 911168  }
  0x42   : > { %401 = vrot.lane.b32.xlu1 %v615_v10, %s781_s26  ;;  %v608_v19 = vld.sshfl [vmem:[%s893_s25 + $0x1a] sm:$0x3 pattern:$0x76325410]  ;;  %vm371_vm14 = vcmask 976768   ;;  %s634_s24 = sshll.u32 %s827_s10, 6 }
  0x43   : > { %293 = vrot.lane.b32.xlu0 %v600_v11, %s788_s4  ;;  %v625_v20 = vld.sshfl [vmem:[%s893_s25 + $0x2c] sm:$0x3 pattern:$0x76325410]  ;;  %vm386_vm15 = vcmask 1042368   ;;  %s976_s26 = scalar_lea.hbm %s1024_s1, %s634_s24 }
  0x44   : > { %v610_v21 = vld.sshfl [vmem:[%s893_s25 + $0x1c] sm:$0x3 pattern:$0x76325410] }
  0x45   : > { %v627_v22 = vld.sshfl [vmem:[%s893_s25 + $0x2e] sm:$0x3 pattern:$0x76325410] }
  0x46   : > { %415 = vrot.lane.b32.xlu1 %v617_v12, %s783_s28  ;;  %v612_v23 = vld.sshfl [vmem:[%s893_s25 + $0x1e] sm:$0x3 pattern:$0x76325410]  ;;  %s504_s25 = sshll.u32 %s906_s17, 4  ;;  %s795_s28 = smov [#allocation5]   ;;  %s978_s25 = int_to_ptr.vmem [resolvable:$true] %s504_s25 }
  0x47   : > { %308 = vrot.lane.b32.xlu0 %v602_v13, %s789_s5  ;;  %s706_s10 = scalar_lea.vmem %s978_s25, 64 }
  0x48   : > { %p707_p1 = scmp.ne.s32.totalorder %s978_s25, %s706_s10 }
  0x4a   : > { %429 = vrot.lane.b32.xlu1 %v619_v14, %s780_s20  ;;  %p708_p2 = pnand %p707_p1, %p854_p9 }
  0x4b   : > { %323 = vrot.lane.b32.xlu0 %v604_v15, %s790_s11 }
  0x4c   : > { %p709_p3 = pneg %p708_p2 }
  0x4e   : > { %443 = vrot.lane.b32.xlu1 %v621_v16, %s782_s27  ;;  %s490_s27 = scalar_lea.sflag [#allocation4], %s889_s22 }
  0x4f   : > { %338 = vrot.lane.b32.xlu0 %v606_v17, %s791_s13 }
  0x52   : > { %457 = vrot.lane.b32.xlu1 %v623_v18, %s785_s30 }
  0x53   : > { %353 = vrot.lane.b32.xlu0 %v608_v19, %s792_s14 }
  0x56   : > { %471 = vrot.lane.b32.xlu1 %v625_v20, %s784_s29  ;;  %s710_s29 = sshll.u32 %s795_s28, 4  ;;  %s711_s29 = int_to_ptr.vmem [resolvable:$false] %s710_s29 }
  0x57   : > { %368 = vrot.lane.b32.xlu0 %v610_v21, %s793_s21  ;;  %s712_s30 = scalar_lea.vmem %s711_s29, 128  ;;  %p713_p4 = scmp.lt.s32.totalorder %s978_s25, %s711_s29 }
  0x58   : > { %p714_p5 = scmp.lt.s32.totalorder %s712_s30, %s706_s10 }
  0x5a   : > { %485 = vrot.lane.b32.xlu1 %v627_v22, %s787_s3  ;;  %p715_p6 = por %p714_p5, %p713_p4 }
  0x5b   : > { %383 = vrot.lane.b32.xlu0 %v612_v23, %s794_s23 }
  0x5c   : > { %p716_p7 = pnand %p715_p6, %p709_p3 }
  0xa4   : > { %v204_v24 = vpop.permute.xlu1 %203 }
  0xa5   : > { %v174_v25 = vpop.permute.xlu0 %173 }
  0xa6   : > { %177 = vst.msk [vmem:[%s906_s17] sm:$0x3] %vm176_vm1, %v174_v25 }
  0xa8   : > { %v219_v26 = vpop.permute.xlu1 %218 }
  0xa9   : > { %v189_v27 = vpop.permute.xlu0 %188 }
  0xaa   : > { %192 = vst.msk [vmem:[%s906_s17] sm:$0x3] %vm191_vm2, %v189_v27 }
  0xab   : > { %207 = vst.msk [vmem:[%s906_s17] sm:$0x3] %vm206_vm3, %v204_v24 }
  0xac   : > { %v249_v28 = vpop.permute.xlu1 %248  ;;  %222 = vst.msk [vmem:[%s906_s17] sm:$0x3] %vm221_vm4, %v219_v26 }
  0xad   : > { %v234_v29 = vpop.permute.xlu0 %233 }
  0xae   : > { %237 = vst.msk [vmem:[%s906_s17] sm:$0x3] %vm236_vm5, %v234_v29 }
  0xaf   : > { %252 = vst.msk [vmem:[%s906_s17] sm:$0x3] %vm251_vm6, %v249_v28 }
  0xb0   : > { %v279_v30 = vpop.permute.xlu1 %278 }
  0xb1   : > { %v264_v31 = vpop.permute.xlu0 %263 }
  0xb2   : > { %267 = vst.msk [vmem:[%s906_s17] sm:$0x3] %vm266_vm7, %v264_v31 }
  0xb3   : > { %282 = vst.msk [vmem:[%s906_s17] sm:$0x3] %vm281_vm8, %v279_v30 }
  0xb4   : > { %v402_v32 = vpop.permute.xlu1 %401 }
  0xb5   : > { %404 = vst.msk [vmem:[%s906_s17 + $0x2] sm:$0x3] %vm176_vm1, %v402_v32  ;;  %v294_v33 = vpop.permute.xlu0 %293 }
  0xb6   : > { %297 = vst.msk [vmem:[%s906_s17] sm:$0x3] %vm296_vm9, %v294_v33 }
  0xb8   : > { %v416_v34 = vpop.permute.xlu1 %415 }
  0xb9   : > { %418 = vst.msk [vmem:[%s906_s17 + $0x2] sm:$0x3] %vm191_vm2, %v416_v34  ;;  %v309_v35 = vpop.permute.xlu0 %308 }
  0xba   : > { %312 = vst.msk [vmem:[%s906_s17] sm:$0x3] %vm311_vm10, %v309_v35 }
  0xbc   : > { %v430_v36 = vpop.permute.xlu1 %429 }
  0xbd   : > { %432 = vst.msk [vmem:[%s906_s17 + $0x2] sm:$0x3] %vm206_vm3, %v430_v36  ;;  %v324_v37 = vpop.permute.xlu0 %323 }
  0xbe   : > { %327 = vst.msk [vmem:[%s906_s17] sm:$0x3] %vm326_vm11, %v324_v37 }
  0xc0   : > { %v444_v38 = vpop.permute.xlu1 %443 }
  0xc1   : > { %446 = vst.msk [vmem:[%s906_s17 + $0x2] sm:$0x3] %vm221_vm4, %v444_v38  ;;  %v339_v39 = vpop.permute.xlu0 %338 }
  0xc2   : > { %342 = vst.msk [vmem:[%s906_s17] sm:$0x3] %vm341_vm12, %v339_v39 }
  0xc4   : > { %v458_v40 = vpop.permute.xlu1 %457 }
  0xc5   : > { %460 = vst.msk [vmem:[%s906_s17 + $0x2] sm:$0x3] %vm236_vm5, %v458_v40  ;;  %v354_v41 = vpop.permute.xlu0 %353 }
  0xc6   : > { %357 = vst.msk [vmem:[%s906_s17] sm:$0x3] %vm356_vm13, %v354_v41 }
  0xc8   : > { %v472_v42 = vpop.permute.xlu1 %471 }
  0xc9   : > { %474 = vst.msk [vmem:[%s906_s17 + $0x2] sm:$0x3] %vm251_vm6, %v472_v42  ;;  %v369_v43 = vpop.permute.xlu0 %368 }
  0xca   : > { %372 = vst.msk [vmem:[%s906_s17] sm:$0x3] %vm371_vm14, %v369_v43 }
  0xcc   : > { %v486_v44 = vpop.permute.xlu1 %485 }
  0xcd   : > { %488 = vst.msk [vmem:[%s906_s17 + $0x2] sm:$0x3] %vm266_vm7, %v486_v44  ;;  %v384_v45 = vpop.permute.xlu0 %383 }
  0xce   : > { %387 = vst.msk [vmem:[%s906_s17] sm:$0x3] %vm386_vm15, %v384_v45 }
  0xcf   : > { %719 = shalt.err (!%p716_p7)
}
  0xd0   : > { %s720_s22 = scalar_lea.hbm %s976_s26, 64  ;;  %s724_s3 = scalar_lea.hbm %s1024_s1, 128 }
  0xd1   : > { %p721_p8 = scmp.ne.s32.totalorder %s976_s26, %s720_s22  ;;  %p725_p0 = scmp.lt.u32.totalorder %s976_s26, %s1024_s1 }
  0xd2   : > { %p726_p1 = scmp.lt.u32.totalorder %s724_s3, %s720_s22  ;;  %p728_p3 = scmp.lt.u32.totalorder %s720_s22, %s976_s26 }
  0xd3   : > { %p722_p12 = pnand %p721_p8, %p854_p9 }
  0xd4   : > { %p727_p2 = por %p726_p1, %p725_p0 }
  0xd5   : > { %p723_p13 = pneg %p722_p12 }
  0xd6   : > { %p729_p4 = por %p728_p3, %p727_p2 }
  0xd8   : > { %p730_p5 = pnand %p729_p4, %p723_p13 }
  0xda   : > { %733 = shalt.err (!%p730_p5)
}
  0xdb   : > { %646 = dma.vmem_to_hbm [thread:$0]  (%p854_p9), %s978_s25, 64, %s976_s26, %s490_s27  }
  0xdc PF: > { %s516_s11 = sand.u32 1, %s760_s6   ;;  %p649_p6 = pnand %p576_p11, %p858_p10 }
  0xdd   : > { %s517_s13 = scalar_lea.sflag [#allocation4], %s516_s11 }
  0xde   : > { %755 = dma.done.wait (!%p649_p6), %s517_s13, 64  }
  0xdf   : > { %757 = vsyncadd (!%p649_p6), %s517_s13, 4294967232  ;;  %p14_p7 = scmp.ge.s32.totalorder %s831_s12, 4   ;;  %s1029_s6 = smov %s764_s7 }
  0xe0   : > { %s1030_s7 = smov %s768_s8  ;;  %s1031_s8 = smov %s843_s15 }
  0xe1   : > { %s1032_s9 = smov %s831_s12  ;;  %16 = sbr.rel (!%p14_p7) target bundleno = 5 (0x5), region = 97 }
  0xe8   :  { %522 = vsyncpa [#allocation3], 1 }
  0xe9   :  { %524 = vsyncpa [#allocation3 + $0x1], 1 }
  0xea   :  { %525 = vsyncpa [#allocation4], 1 }
  0xeb   :  { %527 = vsyncpa [#allocation4 + $0x1], 1 }

</bundles_post_ra>
